<compile_context>
chip_gen: v7x
topology: tpu7x:2x2x1
jax: 0.10.0
libtpu: 0.0.40
codegen_flags: <defaults>
</compile_context>

<pallas_src>
import jax
import jax.numpy as jnp
from jax.experimental import pallas as pl
from jax.experimental.pallas import tpu as pltpu


def _relation_injector_kernel(ing_ref, rel_ref, w_ih_ref, w_hh_ref,
                              b_ih_ref, b_hh_ref, h0_ref, out_ref):
    B, S, N = ing_ref.shape                    # static shapes
    f32 = jnp.float32

    # ---- tiny GRU parameters: (3,1) column vectors resident in VMEM --------
    # Broadcasts hoisted ONCE (JAX does not CSE broadcast_in_dim inside the
    # unrolled loop).
    w_rz = jnp.broadcast_to(w_hh_ref[0:2, :], (2, N))   # [w_hr; w_hz]
    w_hn = jnp.broadcast_to(w_hh_ref[2:3, :], (1, N))
    b_rz = b_ih_ref[0:2, :] + b_hh_ref[0:2, :]           # (2,1) folded r/z biases
    b_in = b_ih_ref[2:3, :]                               # (1,1)
    b_hn = jnp.broadcast_to(b_hh_ref[2:3, :], (1, N))

    # ---- hoisted, h-independent work: add + relu + input projection --------
    # One tiny (3,S)@(S,N) MXU matmul per time step; gate biases folded here.
    # All of this sits OFF the serial recurrence chain (LLO overlaps it).
    w_ih = w_ih_ref[...]
    gi_rz, gi_n = [], []
    for t in range(B):                          # B is tiny -> fully unrolled
        x_t = jnp.maximum(ing_ref[t].astype(f32) + rel_ref[t].astype(f32), 0.0)
        g = jnp.dot(w_ih, x_t, preferred_element_type=f32)   # (3, N)
        gi_rz.append(g[0:2] + b_rz)             # (2, N) r/z pre-activations
        gi_n.append(g[2:3] + b_in)              # (1, N) n   pre-activation

    # ---- serial recurrence over the B "time" steps: pure VPU/EUP -----------
    h = h0_ref[...].astype(f32)                 # (1, N) hidden state (hidden_size=1)
    outs = []
    # TODO(synk): switch to lax.fori_loop (carry h, per-step store) if B grows large.
    for t in range(B):
        rz = jax.nn.sigmoid(gi_rz[t] + w_rz * h)   # fused r/z: one EUP push on (2,N)
        r = rz[0:1]
        z = rz[1:2]
        n = jnp.tanh(gi_n[t] + r * (w_hn * h + b_hn))
        h = (1.0 - z) * n + z * h
        outs.append(h)

    # Single store of all B hidden rows.  (N=32 < 128 lanes -> masked vst; noise
    # at this size.  If T*D grows to >=128 in production, keep N lane-dense.)
    out_ref[...] = jnp.concatenate(outs, axis=0)


def relation_injector(ing, rel, w_ih, w_hh, b_ih, b_hh, h0):
    B, S, T, D = ing.shape
    N = T * D
    # Contiguous (layout-preserving) reshapes only -- no transpose copies here.
    x_i = ing.reshape(B, S, N)
    x_r = rel.reshape(B, S, N)
    w_hh_c = w_hh.reshape(3, 1)
    b_ih_c = b_ih.reshape(3, 1)
    b_hh_c = b_hh.reshape(3, 1)

    vmem = pl.BlockSpec(memory_space=pltpu.MemorySpace.VMEM)
    out = pl.pallas_call(
        _relation_injector_kernel,
        out_shape=jax.ShapeDtypeStruct((B, N), jnp.float32),
        in_specs=[vmem] * 7,     # whole arrays (~13 KB total) resident in VMEM
        out_specs=vmem,
        # TODO(synk): if many independent (B,S,T,D) items are processed, stack them
        # and add a leading 'parallel' grid axis (amortizes launch overhead and uses
        # the second TensorCore on v7x).
    )(x_i, x_r, w_ih, w_hh_c, b_ih_c, b_hh_c, h0)

    # PyTorch: gru_out (B, N, 1) -> transpose(1,2) -> (B, 1, N) -> view(B, T, D)
    return out.reshape(B, T, D)


def reference(ing, rel, w_ih, w_hh, b_ih, b_hh, h0):
    # pure-JAX reference for correctness check (PyTorch GRU gate math)
    B, S, T, D = ing.shape
    N = T * D
    w_hh = jnp.reshape(w_hh, (3,))
    x = jnp.maximum(ing + rel, 0.0).reshape(B, S, N)
    h = h0                                            # (1, N)
    outs = []
    for t in range(B):
        x_t = x[t]                                    # (S, N)
        gi = w_ih @ x_t + b_ih[:, None]               # (3, N)
        gh = w_hh[:, None] * h + b_hh[:, None]        # (3, N)
        r = jax.nn.sigmoid(gi[0:1] + gh[0:1])
        z = jax.nn.sigmoid(gi[1:2] + gh[1:2])
        n = jnp.tanh(gi[2:3] + r * gh[2:3])
        h = (1.0 - z) * n + z * h
        outs.append(h)
    return jnp.stack(outs, 0).reshape(B, T, D)


if __name__ == "__main__":
    key = jax.random.PRNGKey(0)
    # seq_len must equal GRU input_size (=20) for the PyTorch module to run at all.
    B, S, T, D = 2, 20, 8, 4
    H = 1
    N = T * D

    k_ing, k_rel, k_wih, k_whh, k_bih, k_bhh, k_h0 = jax.random.split(key, 7)
    ing = jax.random.normal(k_ing, (B, S, T, D), jnp.float32)
    rel = jax.random.normal(k_rel, (B, S, T, D), jnp.float32)

    bound = 1.0 / (H ** 0.5)  # PyTorch GRU init range
    w_ih = jax.random.uniform(k_wih, (3 * H, S), jnp.float32, -bound, bound)
    w_hh = jax.random.uniform(k_whh, (3 * H, H), jnp.float32, -bound, bound)
    b_ih = jax.random.uniform(k_bih, (3 * H,), jnp.float32, -bound, bound)
    b_hh = jax.random.uniform(k_bhh, (3 * H,), jnp.float32, -bound, bound)
    # PyTorch draws h_0 = randn(1, T*D, 1) fresh each forward (non-deterministic);
    # here it is a deterministic PRNGKey draw passed as an input, laid out (H, N).
    h0 = jax.random.normal(k_h0, (H, N), jnp.float32)

    out = relation_injector(ing, rel, w_ih, w_hh, b_ih, b_hh, h0)
    jax.block_until_ready(out)

    ref = reference(ing, rel, w_ih, w_hh, b_ih, b_hh, h0)
    assert out.shape == (B, T, D)
    assert jnp.allclose(out, ref, atol=1e-3, rtol=1e-3)
    print("KERNEL_OK")
</pallas_src>

<mosaic_0001>
module attributes {stable_mosaic.version = 11 : i64} {
  func.func @_relation_injector_kernel(%arg0: memref<2x20x32xf32, #tpu.memory_space<vmem>>, %arg1: memref<2x20x32xf32, #tpu.memory_space<vmem>>, %arg2: memref<3x20xf32, #tpu.memory_space<vmem>>, %arg3: memref<3x1xf32, #tpu.memory_space<vmem>>, %arg4: memref<3x1xf32, #tpu.memory_space<vmem>>, %arg5: memref<3x1xf32, #tpu.memory_space<vmem>>, %arg6: memref<1x32xf32, #tpu.memory_space<vmem>>, %arg7: memref<2x32xf32, #tpu.memory_space<vmem>>) attributes {dimension_semantics = [], scalar_prefetch = 0 : i64, scratch_operands = 0 : i64, tpu.core_type = #tpu.core_type<tc>} {
    %c0 = arith.constant 0 : index
    %c0_0 = arith.constant 0 : index
    %0 = vector.load %arg3[%c0, %c0_0] : memref<3x1xf32, #tpu.memory_space<vmem>>, vector<2x1xf32>
    %1 = vector.shape_cast %0 : vector<2x1xf32> to vector<2x1xf32>
    %2 = vector.broadcast %1 : vector<2x1xf32> to vector<2x32xf32>
    %c2 = arith.constant 2 : index
    %c0_1 = arith.constant 0 : index
    %3 = vector.load %arg3[%c2, %c0_1] : memref<3x1xf32, #tpu.memory_space<vmem>>, vector<1x1xf32>
    %4 = vector.shape_cast %3 : vector<1x1xf32> to vector<1x1xf32>
    %5 = vector.broadcast %4 : vector<1x1xf32> to vector<1x32xf32>
    %c0_2 = arith.constant 0 : index
    %c0_3 = arith.constant 0 : index
    %6 = vector.load %arg4[%c0_2, %c0_3] : memref<3x1xf32, #tpu.memory_space<vmem>>, vector<2x1xf32>
    %c0_4 = arith.constant 0 : index
    %c0_5 = arith.constant 0 : index
    %7 = vector.load %arg5[%c0_4, %c0_5] : memref<3x1xf32, #tpu.memory_space<vmem>>, vector<2x1xf32>
    %8 = arith.addf %6, %7 : vector<2x1xf32>
    %c2_6 = arith.constant 2 : index
    %c0_7 = arith.constant 0 : index
    %9 = vector.load %arg4[%c2_6, %c0_7] : memref<3x1xf32, #tpu.memory_space<vmem>>, vector<1x1xf32>
    %c2_8 = arith.constant 2 : index
    %c0_9 = arith.constant 0 : index
    %10 = vector.load %arg5[%c2_8, %c0_9] : memref<3x1xf32, #tpu.memory_space<vmem>>, vector<1x1xf32>
    %11 = vector.shape_cast %10 : vector<1x1xf32> to vector<1x1xf32>
    %12 = vector.broadcast %11 : vector<1x1xf32> to vector<1x32xf32>
    %c0_10 = arith.constant 0 : index
    %c0_11 = arith.constant 0 : index
    %13 = vector.load %arg2[%c0_10, %c0_11] : memref<3x20xf32, #tpu.memory_space<vmem>>, vector<3x20xf32>
    %c0_12 = arith.constant 0 : index
    %c0_13 = arith.constant 0 : index
    %c0_14 = arith.constant 0 : index
    %14 = vector.load %arg0[%c0_12, %c0_13, %c0_14] : memref<2x20x32xf32, #tpu.memory_space<vmem>>, vector<1x20x32xf32>
    %15 = vector.shape_cast %14 : vector<1x20x32xf32> to vector<20x32xf32>
    %c0_15 = arith.constant 0 : index
    %c0_16 = arith.constant 0 : index
    %c0_17 = arith.constant 0 : index
    %16 = vector.load %arg1[%c0_15, %c0_16, %c0_17] : memref<2x20x32xf32, #tpu.memory_space<vmem>>, vector<1x20x32xf32>
    %17 = vector.shape_cast %16 : vector<1x20x32xf32> to vector<20x32xf32>
    %18 = arith.addf %15, %17 : vector<20x32xf32>
    %cst = arith.constant 0.000000e+00 : f32
    %19 = vector.broadcast %cst : f32 to vector<20x32xf32>
    %20 = arith.maximumf %18, %19 : vector<20x32xf32>
    %cst_18 = arith.constant dense<0.000000e+00> : vector<3x32xf32>
    %21 = tpu.matmul %13, %20, %cst_18 {dimension_numbers = #tpu.dot_dimension_numbers<[1], [0], [0], [1], [0, 0, 1, 1], [], []>} : vector<3x20xf32>, vector<20x32xf32>, vector<3x32xf32> -> vector<3x32xf32>
    %22 = vector.extract_strided_slice %21 {offsets = [0, 0], sizes = [2, 32], strides = [1, 1]} : vector<3x32xf32> to vector<2x32xf32>
    %23 = vector.broadcast %8 : vector<2x1xf32> to vector<2x32xf32>
    %24 = arith.addf %22, %23 : vector<2x32xf32>
    %25 = vector.extract_strided_slice %21 {offsets = [2, 0], sizes = [1, 32], strides = [1, 1]} : vector<3x32xf32> to vector<1x32xf32>
    %26 = vector.broadcast %9 : vector<1x1xf32> to vector<1x32xf32>
    %27 = arith.addf %25, %26 : vector<1x32xf32>
    %c1 = arith.constant 1 : index
    %c0_19 = arith.constant 0 : index
    %c0_20 = arith.constant 0 : index
    %28 = vector.load %arg0[%c1, %c0_19, %c0_20] : memref<2x20x32xf32, #tpu.memory_space<vmem>>, vector<1x20x32xf32>
    %29 = vector.shape_cast %28 : vector<1x20x32xf32> to vector<20x32xf32>
    %c1_21 = arith.constant 1 : index
    %c0_22 = arith.constant 0 : index
    %c0_23 = arith.constant 0 : index
    %30 = vector.load %arg1[%c1_21, %c0_22, %c0_23] : memref<2x20x32xf32, #tpu.memory_space<vmem>>, vector<1x20x32xf32>
    %31 = vector.shape_cast %30 : vector<1x20x32xf32> to vector<20x32xf32>
    %32 = arith.addf %29, %31 : vector<20x32xf32>
    %cst_24 = arith.constant 0.000000e+00 : f32
    %33 = vector.broadcast %cst_24 : f32 to vector<20x32xf32>
    %34 = arith.maximumf %32, %33 : vector<20x32xf32>
    %cst_25 = arith.constant dense<0.000000e+00> : vector<3x32xf32>
    %35 = tpu.matmul %13, %34, %cst_25 {dimension_numbers = #tpu.dot_dimension_numbers<[1], [0], [0], [1], [0, 0, 1, 1], [], []>} : vector<3x20xf32>, vector<20x32xf32>, vector<3x32xf32> -> vector<3x32xf32>
    %36 = vector.extract_strided_slice %35 {offsets = [0, 0], sizes = [2, 32], strides = [1, 1]} : vector<3x32xf32> to vector<2x32xf32>
    %37 = vector.broadcast %8 : vector<2x1xf32> to vector<2x32xf32>
    %38 = arith.addf %36, %37 : vector<2x32xf32>
    %39 = vector.extract_strided_slice %35 {offsets = [2, 0], sizes = [1, 32], strides = [1, 1]} : vector<3x32xf32> to vector<1x32xf32>
    %40 = vector.broadcast %9 : vector<1x1xf32> to vector<1x32xf32>
    %41 = arith.addf %39, %40 : vector<1x32xf32>
    %c0_26 = arith.constant 0 : index
    %c0_27 = arith.constant 0 : index
    %42 = vector.load %arg6[%c0_26, %c0_27] : memref<1x32xf32, #tpu.memory_space<vmem>>, vector<1x32xf32>
    %43 = vector.broadcast %42 : vector<1x32xf32> to vector<2x32xf32>
    %44 = arith.mulf %2, %43 : vector<2x32xf32>
    %45 = arith.addf %24, %44 : vector<2x32xf32>
    %46 = arith.negf %45 : vector<2x32xf32>
    %47 = math.exp %46 : vector<2x32xf32>
    %cst_28 = arith.constant 1.000000e+00 : f32
    %48 = vector.broadcast %cst_28 : f32 to vector<2x32xf32>
    %49 = arith.addf %48, %47 : vector<2x32xf32>
    %50 = arith.divf %48, %49 : vector<2x32xf32>
    %51 = vector.extract_strided_slice %50 {offsets = [0, 0], sizes = [1, 32], strides = [1, 1]} : vector<2x32xf32> to vector<1x32xf32>
    %52 = vector.extract_strided_slice %50 {offsets = [1, 0], sizes = [1, 32], strides = [1, 1]} : vector<2x32xf32> to vector<1x32xf32>
    %53 = arith.mulf %5, %42 : vector<1x32xf32>
    %54 = arith.addf %53, %12 : vector<1x32xf32>
    %55 = arith.mulf %51, %54 : vector<1x32xf32>
    %56 = arith.addf %27, %55 : vector<1x32xf32>
    %57 = math.tanh %56 : vector<1x32xf32>
    %cst_29 = arith.constant 1.000000e+00 : f32
    %58 = vector.broadcast %cst_29 : f32 to vector<1x32xf32>
    %59 = arith.subf %58, %52 : vector<1x32xf32>
    %60 = arith.mulf %59, %57 : vector<1x32xf32>
    %61 = arith.mulf %52, %42 : vector<1x32xf32>
    %62 = arith.addf %60, %61 : vector<1x32xf32>
    %63 = vector.broadcast %62 : vector<1x32xf32> to vector<2x32xf32>
    %64 = arith.mulf %2, %63 : vector<2x32xf32>
    %65 = arith.addf %38, %64 : vector<2x32xf32>
    %66 = arith.negf %65 : vector<2x32xf32>
    %67 = math.exp %66 : vector<2x32xf32>
    %cst_30 = arith.constant 1.000000e+00 : f32
    %68 = vector.broadcast %cst_30 : f32 to vector<2x32xf32>
    %69 = arith.addf %68, %67 : vector<2x32xf32>
    %70 = arith.divf %68, %69 : vector<2x32xf32>
    %71 = vector.extract_strided_slice %70 {offsets = [0, 0], sizes = [1, 32], strides = [1, 1]} : vector<2x32xf32> to vector<1x32xf32>
    %72 = vector.extract_strided_slice %70 {offsets = [1, 0], sizes = [1, 32], strides = [1, 1]} : vector<2x32xf32> to vector<1x32xf32>
    %73 = arith.mulf %5, %62 : vector<1x32xf32>
    %74 = arith.addf %73, %12 : vector<1x32xf32>
    %75 = arith.mulf %71, %74 : vector<1x32xf32>
    %76 = arith.addf %41, %75 : vector<1x32xf32>
    %77 = math.tanh %76 : vector<1x32xf32>
    %cst_31 = arith.constant 1.000000e+00 : f32
    %78 = vector.broadcast %cst_31 : f32 to vector<1x32xf32>
    %79 = arith.subf %78, %72 : vector<1x32xf32>
    %80 = arith.mulf %79, %77 : vector<1x32xf32>
    %81 = arith.mulf %72, %62 : vector<1x32xf32>
    %82 = arith.addf %80, %81 : vector<1x32xf32>
    %83 = tpu.concatenate %62, %82 in 0 : vector<1x32xf32>, vector<1x32xf32> -> vector<2x32xf32>
    %c0_32 = arith.constant 0 : index
    %c0_33 = arith.constant 0 : index
    %84 = vector.load %arg7[%c0_32, %c0_33] : memref<2x32xf32, #tpu.memory_space<vmem>>, vector<2x32xf32>
    tpu.vector_store %arg7[%c0_32, %c0_33], %83 {strides = array<i32>} : memref<2x32xf32, #tpu.memory_space<vmem>>, vector<2x32xf32>,
    return
  }
}

</mosaic_0001>

<bundles_post_ra>
// kernel: tpu_custom_call.1
= control target key start
LH: loop header
LB: loop body
LE: loop exit
PB: predicated region body
PF: predicated region fallthrough
CT: control target
= control target key end

     0   :  { %v407_v3 = vmov 0.0|0.0   ;;  %vm408_vm0 = vmmov 0   ;;  %v409_v12 = vmov 0.0   ;;  %v410_v18 = vmov 0   ;;  %s524_s0 = inlined_call_operand.vmem [shape: f32[2,20,32], index: 0, kind: input, shape index: {}]   ;;  %s525_s1 = inlined_call_operand.vmem [shape: f32[2,20,32], index: 1, kind: input, shape index: {}]   ;;  %s526_s2 = inlined_call_operand.vmem [shape: f32[3,20], index: 2, kind: input, shape index: {}]   ;;  %s527_s3 = inlined_call_operand.vmem [shape: f32[3,1], index: 3, kind: input, shape index: {}]   ;;  %s528_s4 = inlined_call_operand.vmem [shape: f32[3,1], index: 4, kind: input, shape index: {}]   ;;  %s529_s5 = inlined_call_operand.vmem [shape: f32[3,1], index: 5, kind: input, shape index: {}]   ;;  %s530_s6 = inlined_call_operand.vmem [shape: f32[1,32], index: 6, kind: input, shape index: {}]   ;;  %s531_s7 = inlined_call_operand.hbm [shape: f32[2,32], index: 7, kind: output, shape index: {}]  }
   0x1   :  { %v50_v0 = vld [vmem:[%s524_s0] sm:$0xff]  ;;  %v51_v1 = vld [vmem:[%s524_s0 + $0x8] sm:$0xff]  ;;  %358 = vmatprep.subr.bf16.mxu0 %v407_v3  ;;  %361 = vmatprep.subr.bf16.mxu1 %v407_v3  ;;  %v322_v6 = vld [vmem:[%s524_s0 + $0x18] sm:$0xff] }
   0x2   :  { %v53_v2 = vld [vmem:[%s525_s1] sm:$0xff]  ;;  %v54_v4 = vld [vmem:[%s525_s1 + $0x8] sm:$0xff]  ;;  %v325_v9 = vld [vmem:[%s525_s1 + $0x18] sm:$0xff]  ;;  %346 = vmatprep.mubr.msk.f32.mxu0 %vm408_vm0, %v409_v12  ;;  %355 = vmatprep.mubr.msk.f32.mxu1 %vm408_vm0, %v409_v12 }
   0x3   :  { %v56_v5 = vadd.f32 %v53_v2, %v50_v0  ;;  %v323_v7 = vld [vmem:[%s524_s0 + $0x20] sm:$0xff]  ;;  %v57_v8 = vadd.f32 %v54_v4, %v51_v1  ;;  %v52_v11 = vld [vmem:[%s524_s0 + $0x10] sm:$0xf]  ;;  %v161_v14 = vadd.f32 %v325_v9, %v322_v6  ;;  %v324_v17 = vld [vmem:[%s524_s0 + $0x28] sm:$0xf]  ;;  %369 = vset.pattern.permute.xlu0 %v410_v18  ;;  %370 = vset.pattern.permute.xlu1 %v410_v18 }
   0x4   :  { %v326_v10 = vld [vmem:[%s525_s1 + $0x20] sm:$0xff]  ;;  %v55_v16 = vld [vmem:[%s525_s1 + $0x10] sm:$0xf]  ;;  %v327_v21 = vld [vmem:[%s525_s1 + $0x28] sm:$0xf] }
   0x5   :  { %v59_v13 = vmax.f32 %v56_v5, 0.0  ;;  %v162_v15 = vadd.f32 %v326_v10, %v323_v7  ;;  %v60_v19 = vmax.f32 %v57_v8, 0.0  ;;  %v58_v20 = vadd.f32 %v55_v16, %v52_v11  ;;  %v27_v25 = vld [vmem:[%s527_s3] sm:$0x3]  ;;  %v33_v31 = vld [vmem:[%s527_s3 + $0x2] sm:$0x1] }
   0x6   :  { %v164_v22 = vmax.f32 %v161_v14, 0.0  ;;  %v163_v24 = vadd.f32 %v327_v21, %v324_v17  ;;  %v39_v26 = vld [vmem:[%s528_s4] sm:$0x3]  ;;  %30 = vperm.xlu0 %369, %v27_v25   ;;  %36 = vperm.xlu1 %370, %v33_v31  }
   0x7   :  { %v165_v23 = vmax.f32 %v162_v15, 0.0  ;;  %v359_v27 = vpack.c.bf16 %v60_v19, %v59_v13  ;;  %v40_v28 = vld [vmem:[%s529_s5] sm:$0x3]  ;;  %v61_v32 = vmax.f32 %v58_v20, 0.0 }
   0x8   :  { %v41_v30 = vadd.f32 %v40_v28, %v39_v26 }
   0x9   :  { %v362_v29 = vpack.c.bf16 %v165_v23, %v164_v22  ;;  %360 = vmatpush3.bf16.msra.mxu0 %v359_v27 }
   0xa   :  { %12 = vsyncpa [#allocation3], 0  ;;  %344 = vmatprep.subr.mxu0 %v409_v12  ;;  %vm66_vm1 = vcmask 1043456   ;;  %v166_v33 = vmax.f32 %v163_v24, 0.0  ;;  %v43_v34 = vld [vmem:[%s529_s5 + $0x2] sm:$0x1]  ;;  %142 = vperm.xlu0 %369, %v41_v30   ;;  %v244_v37 = vlaneseq }
   0xb   :  { %363 = vmatpush3.bf16.msra.mxu1 %v362_v29  ;;  %v49_v35 = vld [vmem:[%s526_s2] sm:$0x7]  ;;  %vm62_vm2 = vcmask 162816   ;;  %46 = vperm.xlu1 %370, %v43_v34   ;;  %s411_s2 = smov [#allocation2]   ;;  %vm302_vm3 = vcmask 1040384   ;;  %vm304_vm4 = vcmask 254976  }
   0xc   :  { %353 = vmatprep.subr.mxu1 %v409_v12  ;;  %v42_v36 = vld [vmem:[%s528_s4 + $0x2] sm:$0x1]  ;;  %v245_v38 = vshrl.u32 %v244_v37, 7  ;;  %v242_v40 = vld [vmem:[%s530_s6] sm:$0x1]  ;;  %s312_s4 = sshll.u32 %s411_s2, 4  ;;  %s313_s4 = int_to_ptr.vmem [resolvable:$true] %s312_s4 }
   0xd   :  { %345 = vmatpush3.msk.msra.mxu0 %vm66_vm1, %v61_v32  ;;  %s383_s6 = scalar_lea.vmem %s313_s4, 32  ;;  %p388_p1 = scmp.lt.s32.totalorder %s313_s4, %s313_s4 }
   0xe   :  { %347 = vmatmul.mubr.msk.f32.vlgmr.msra.gmra.mrb[0].mxu0 %vm62_vm2, %v49_v35  ;;  %148 = vperm.xlu0 %369, %v42_v36   ;;  %v246_v39 = vsub.s32 0, %v245_v38  ;;  %v274_v4 = vsub.s32 1, %v245_v38  ;;  %p384_p0 = scmp.ne.s32.totalorder %s313_s4, %s383_s6  ;;  %p389_p2 = scmp.lt.s32.totalorder %s383_s6, %s383_s6 }
   0xf   :  { %354 = vmatpush3.msk.msra.mxu1 %vm66_vm1, %v166_v33 }
  0x10   :  { %356 = vmatmul.mubr.msk.f32.vlgmr.msra.gmra.mrb[0].mxu1 %vm62_vm2, %v49_v35  ;;  %v247_v42 = vrot.slane %v242_v40, %v246_v39  ;;  %p390_p3 = por %p389_p2, %p388_p1 }
  0x12   :  { %p391_p4 = pnand %p390_p3, %p384_p0 }
  0x85   :  { %v31_v41 = vpop.permute.xlu0 %30  ;;  %v37_v54 = vpop.permute.xlu1 %36 }
  0x86   :  { %v249_v45 = vmul.f32 %v247_v42, %v31_v41  ;;  %v257_v55 = vmul.f32 %v242_v40, %v37_v54 }
  0x89   :  { %v143_v43 = vpop.permute.xlu0 %142 }
  0x8a   :  { %v47_v56 = vpop.permute.xlu1 %46 }
  0x8b   :  { %v258_v58 = vadd.f32 %v257_v55, %v47_v56 }
  0x8d   :  { %v149_v57 = vpop.permute.xlu0 %148 }
  0x8e   :  { %v150_v60 = vrot.slane %v149_v57, 6 }
  0xe1   :  { %v136_v44 = vpop.f32.mrb[0].mxu0 }
  0xe2   :  { %v145_v46 = vadd.f32 %v143_v43, %v136_v44  ;;  %v348_v48 = vpop.f32.mrb[1].mxu0  ;;  %v152_v62 = vadd.f32 %v150_v60, %v136_v44 }
  0xe3   :  { %v236_v47 = vpop.f32.mrb[0].mxu1 }
  0xe4   :  { %v357_v49 = vpop.f32.mrb[1].mxu1  ;;  %v250_v50 = vadd.f32 %v249_v45, %v145_v46  ;;  %v240_v9 = vadd.f32 %v236_v47, %v143_v43  ;;  %v241_v21 = vadd.f32 %v236_v47, %v150_v60 }
  0xe6   :  { %v330_v51 = vmul.f32 -1.442695, %v250_v50 }
  0xe8   :  { %371 = vpow2.f32 %v330_v51 }
  0xf2   :  { %v372_v52 = vpop.eup %371 }
  0xf3   :  { %v254_v53 = vadd.f32 1.0, %v372_v52 }
  0xf5   :  { %373 = vrcp.f32 %v254_v53 }
  0xff   :  { %v374_v59 = vpop.eup %373 }
 0x100   :  { %v259_v61 = vmul.f32 %v374_v59, %v258_v58  ;;  %v265_v2 = vsub.f32 1.0, %v374_v59  ;;  %v270_v6 = vmul.f32 %v374_v59, %v247_v42 }
 0x102   :  { %v261_v63 = vrot.slane %v259_v61, 6 }
 0x104   :  { %v263_v0 = vadd.f32 %v261_v63, %v152_v62 }
 0x106   :  { %375 = vtanh.f32 %v263_v0 }
 0x110   :  { %v376_v1 = vpop.eup %375 }
 0x111   :  { %v267_v3 = vrot.slane %v376_v1, 1 }
 0x113   :  { %v269_v5 = vmul.f32 %v267_v3, %v265_v2 }
 0x115   :  { %v271_v7 = vadd.f32 %v270_v6, %v269_v5 }
 0x117   :  { %v275_v8 = vrot.slane %v271_v7, %v274_v4  ;;  %v285_v15 = vrot.slane %v271_v7, 1 }
 0x119   :  { %v276_v10 = vmul.f32 %v275_v8, %v31_v41  ;;  %v287_v16 = vmul.f32 %v285_v15, %v37_v54 }
 0x11b   :  { %v277_v11 = vadd.f32 %v276_v10, %v240_v9  ;;  %v288_v17 = vadd.f32 %v287_v16, %v47_v56 }
 0x11d   :  { %v331_v12 = vmul.f32 -1.442695, %v277_v11 }
 0x11f   :  { %377 = vpow2.f32 %v331_v12 }
 0x129   :  { %v378_v13 = vpop.eup %377 }
 0x12a   :  { %v281_v14 = vadd.f32 1.0, %v378_v13 }
 0x12c   :  { %379 = vrcp.f32 %v281_v14 }
 0x136   :  { %v380_v18 = vpop.eup %379 }
 0x137   :  { %v289_v19 = vmul.f32 %v380_v18, %v288_v17  ;;  %v300_v20 = vmul.f32 %v380_v18, %v271_v7  ;;  %v295_v26 = vsub.f32 1.0, %v380_v18 }
 0x139   :  { %v291_v22 = vrot.slane %v289_v19, 6 }
 0x13b   :  { %v293_v23 = vadd.f32 %v291_v22, %v241_v21 }
 0x13d   :  { %381 = vtanh.f32 %v293_v23 }
 0x147   :  { %v382_v24 = vpop.eup %381 }
 0x148   :  { %v297_v25 = vrot.slane %v382_v24, 1 }
 0x14a   :  { %v299_v27 = vmul.f32 %v297_v25, %v295_v26 }
 0x14c   :  { %v301_v28 = vadd.f32 %v300_v20, %v299_v27 }
 0x14e   :  { %v303_v29 = vsel %vm302_vm3, %v285_v15, %v301_v28 }
 0x14f   :  { %305 = vst.msk [vmem:[#allocation2] sm:$0x3] %vm304_vm4, %v303_v29 }
 0x150   :  { %394 = shalt.err (!%p391_p4)
}
 0x151   :  { %s395_s16 = scalar_lea.hbm %s531_s7, 32 }
 0x152   :  { %p396_p5 = scmp.ne.s32.totalorder %s531_s7, %s395_s16  ;;  %p399_p6 = scmp.lt.u32.totalorder %s395_s16, %s531_s7 }
 0x154   :  { %p401_p7 = pnand %p399_p6, %p396_p5 }
 0x156   :  { %404 = shalt.err (!%p401_p7)
}
 0x157   :  { %315 = dma.vmem_to_hbm [thread:$0]  %s313_s4, 32, %s531_s7, [#allocation3]  }
 0x158   :  { %405 = dma.done.wait [#allocation3], 32  }
 0x159   :  { %406 = vsyncadd [#allocation3], 4294967264 }
 0x15a   :  { %319 = vsyncpa [#allocation3], 1 }

</bundles_post_ra>
